<compile_context>
chip_gen: v6e
topology: v6e:2x2x1
jax: 0.10.0
libtpu: 0.0.40
codegen_flags: <defaults>
</compile_context>

<pallas_src>
import functools

import jax
import jax.numpy as jnp
from jax import lax
from jax.experimental import pallas as pl
from jax.experimental.pallas import tpu as pltpu

NEG_SLOPE = 0.5       # nn.LeakyReLU(0.5)
NORM_EPS = 1e-12      # torch F.normalize eps
LOG_EPS = 1e-8


def _ceil_to(x, m):
    return ((x + m - 1) // m) * m


def _pad2d(x, rows, cols):
    r, c = x.shape
    if r == rows and c == cols:
        return x
    return jnp.pad(x, ((0, rows - r), (0, cols - c)))


def _l2norm(x):
    return x / jnp.maximum(
        jnp.sqrt(jnp.sum(x * x, axis=1, keepdims=True)), NORM_EPS)


# --------------------------------------------------------------------------
# Kernel 1: tiled matmul with f32 VMEM accumulator, optional transposed LHS
#           (contract lhs axis 0 -> no materialised adj.T), fused LeakyReLU(0.5)
#           and fused residual add producing E_new = act(A@B) + residual only.
# --------------------------------------------------------------------------
def _mm_kernel(a_ref, b_ref, *rest, leaky, has_res, trans_a):
    if has_res:
        res_ref, e_ref, acc_ref = rest
    else:
        o_ref, acc_ref = rest
    k = pl.program_id(1)

    @pl.when(k == 0)
    def _():
        acc_ref[...] = jnp.zeros_like(acc_ref)

    a = a_ref[...]
    b = b_ref[...]
    if trans_a:
        # a tile is (tk, tm): contract the row axis -> (tm, N).  MXU takes the
        # transposed operand natively; no HBM transpose copy is needed.
        acc_ref[...] += lax.dot_general(
            a, b, (((0,), (0,)), ((), ())), preferred_element_type=jnp.float32)
    else:
        acc_ref[...] += jnp.dot(a, b, preferred_element_type=jnp.float32)

    @pl.when(k == pl.num_programs(1) - 1)
    def _():
        acc = acc_ref[...]
        if leaky:
            acc = jnp.where(acc >= 0.0, acc, NEG_SLOPE * acc)
        if has_res:
            e_ref[...] = (acc + res_ref[...].astype(jnp.float32)).astype(e_ref.dtype)
        else:
            o_ref[...] = acc.astype(o_ref.dtype)


def pallas_matmul(a, b, *, leaky=False, residual=None, trans_a=False,
                  low_precision=False, tm_max=1024, tk_max=2048):
    """Computes act(A @ B) [+ residual]; with trans_a=True, A is taken as a.T."""
    if trans_a:
        K, M = a.shape        # stored as (K, M); logical operand is a.T (M, K)
    else:
        M, K = a.shape
    K2, N = b.shape
    assert K == K2

    if M <= tm_max:                       # full-dim block (no (8,128) constraint)
        tm, Mp = M, M
    else:
        assert tm_max % 128 == 0          # lane dim of the transposed A tile
        tm = tm_max
        Mp = _ceil_to(M, tm)
    if K <= tk_max:
        tk, Kp = K, K
    else:
        assert tk_max % 128 == 0
        tk = tk_max
        Kp = _ceil_to(K, tk)

    if trans_a:
        a_p = _pad2d(a, Kp, Mp)
        a_spec = pl.BlockSpec((tk, tm), lambda i, k: (k, i))
    else:
        a_p = _pad2d(a, Mp, Kp)
        a_spec = pl.BlockSpec((tm, tk), lambda i, k: (i, k))
    b_p = _pad2d(b, Kp, N)
    if low_precision:                     # bf16 storage, f32 MXU accumulation
        a_p = a_p.astype(jnp.bfloat16)
        b_p = b_p.astype(jnp.bfloat16)

    has_res = residual is not None
    in_specs = [a_spec, pl.BlockSpec((tk, N), lambda i, k: (k, 0))]
    operands = [a_p, b_p]
    if has_res:
        operands.append(_pad2d(residual, Mp, N).astype(jnp.float32))
        in_specs.append(pl.BlockSpec((tm, N), lambda i, k: (i, 0)))

    out_shape = jax.ShapeDtypeStruct((Mp, N), jnp.float32)
    out_specs = pl.BlockSpec((tm, N), lambda i, k: (i, 0))

    out = pl.pallas_call(
        functools.partial(_mm_kernel, leaky=leaky, has_res=has_res,
                          trans_a=trans_a),
        out_shape=out_shape,
        grid=(Mp // tm, Kp // tk),
        in_specs=in_specs,
        out_specs=out_specs,
        scratch_shapes=[pltpu.VMEM((tm, N), jnp.float32)],
        compiler_params=pltpu.CompilerParams(
            dimension_semantics=("parallel", "arbitrary"),
            vmem_limit_bytes=48 * 1024 * 1024),
    )(*operands)
    return out[:M]


# --------------------------------------------------------------------------
# Kernel 2: fused contrastive (InfoNCE-style) loss, flash-style tiling with a
#           per-row running max (exact algebra, numerically stable).
#   Inputs gnn = l2norm(z) and hyp = l2norm(g) @ W are HOISTED (computed once).
#   pos = exp(sum(gnn*hyp, -1) / temp)                 (diagonal block)
#   neg = sum_k exp(gnn @ hyp_k.T / temp)              (same-group keys only)
#   per_row = -log(pos / (neg + 1e-8) + 1e-8) * mask   (per-row VMEM output,
#                                                        summed in the wrapper)
# --------------------------------------------------------------------------
def _contrastive_kernel(gnn_ref, hyp_ref, mask_ref, grpq_ref, grpk_ref,
                        out_ref, m_sc, pos_sc, neg_sc, *, temp):
    qi = pl.program_id(0)
    ki = pl.program_id(1)
    nk = pl.num_programs(1)
    inv_temp = 1.0 / temp

    @pl.when(ki == 0)
    def _():
        m_sc[...] = jnp.zeros_like(m_sc)      # running max, clamped at 0
        pos_sc[...] = jnp.zeros_like(pos_sc)
        neg_sc[...] = jnp.zeros_like(neg_sc)

    gnn_q = gnn_ref[...]                      # (tb, d)  query tile
    hyp_k = hyp_ref[...]                      # (tb, d)  key tile
    grp_q = grpq_ref[...]                     # (tb, 1)
    grp_k = grpk_ref[...]                     # (1, tb)

    s = lax.dot_general(gnn_q, hyp_k, (((1,), (1,)), ((), ())),
                        preferred_element_type=jnp.float32) * inv_temp
    # only keys of the same (user/item) group and non-padded keys are negatives
    key_ok = (grp_q == grp_k) & (grp_k > 0.0)
    s_m = jnp.where(key_ok, s, -1e30)

    m_prev = m_sc[...]
    m_new = jnp.maximum(m_prev, jnp.max(s_m, axis=1, keepdims=True))
    alpha = jnp.exp(m_prev - m_new)
    p = jnp.where(key_ok, jnp.exp(s_m - m_new), 0.0)
    neg_sc[...] = alpha * neg_sc[...] + jnp.sum(p, axis=1, keepdims=True)
    pos_sc[...] = alpha * pos_sc[...]
    m_sc[...] = m_new

    @pl.when(ki == qi)
    def _():
        # diagonal block: key rows == query rows -> positive score
        pos_raw = jnp.sum(gnn_q * hyp_k, axis=1, keepdims=True) * inv_temp
        pos_sc[...] = jnp.exp(pos_raw - m_new)

    @pl.when(ki == nk - 1)
    def _():
        mask = mask_ref[...]
        inv_m = jnp.exp(-m_sc[...])           # exact rescale of the 1e-8 eps
        per_row = -jnp.log(pos_sc[...] / (neg_sc[...] + LOG_EPS * inv_m) + LOG_EPS)
        out_ref[...] = per_row * mask


def contrastive_loss(gnn, hyp, mask, group, temp, *, tb_max=512):
    B, d = gnn.shape
    if B <= tb_max:
        tb, Bp = B, B
    else:
        assert tb_max % 128 == 0
        tb = tb_max
        Bp = _ceil_to(B, tb)

    gnn_p = _pad2d(gnn, Bp, d)
    hyp_p = _pad2d(hyp, Bp, d)
    m_p = _pad2d(mask, Bp, 1)            # padded query rows -> zero loss weight
    grp = _pad2d(group, Bp, 1)           # padded key rows -> group 0 (excluded)
    grp_row = grp.reshape(1, Bp)

    nb = Bp // tb
    per_row = pl.pallas_call(
        functools.partial(_contrastive_kernel, temp=float(temp)),
        out_shape=jax.ShapeDtypeStruct((Bp, 1), jnp.float32),
        grid=(nb, nb),
        in_specs=[
            pl.BlockSpec((tb, d), lambda q, k: (q, 0)),      # gnn (query tiles)
            pl.BlockSpec((tb, d), lambda q, k: (k, 0)),      # hyp (key tiles)
            pl.BlockSpec((tb, 1), lambda q, k: (q, 0)),      # loss mask (query)
            pl.BlockSpec((tb, 1), lambda q, k: (q, 0)),      # group id  (query)
            pl.BlockSpec((1, tb), lambda q, k: (0, k)),      # group id  (key)
        ],
        out_specs=pl.BlockSpec((tb, 1), lambda q, k: (q, 0)),
        scratch_shapes=[pltpu.VMEM((tb, 1), jnp.float32),    # running max
                        pltpu.VMEM((tb, 1), jnp.float32),    # pos
                        pltpu.VMEM((tb, 1), jnp.float32)],   # neg
        compiler_params=pltpu.CompilerParams(
            dimension_semantics=("parallel", "arbitrary")),
    )(gnn_p, hyp_p, m_p, grp, grp_row)
    return jnp.sum(per_row)


# --------------------------------------------------------------------------
# Kernel 3: BPR ranking loss, tiled over batch rows, per-row partials summed
#           in the wrapper (single "parallel" axis -> both TCs on v7x).
# --------------------------------------------------------------------------
def _bpr_kernel(u_ref, p_ref, n_ref, valid_ref, out_ref):
    u = u_ref[...].astype(jnp.float32)
    p = p_ref[...].astype(jnp.float32)
    n = n_ref[...].astype(jnp.float32)
    pos = jnp.sum(u * p, axis=1, keepdims=True)
    neg = jnp.sum(u * n, axis=1, keepdims=True)
    out_ref[...] = jnp.maximum(1.0 - pos + neg, 0.0) * valid_ref[...]


def bpr_loss(u_emb, pos_emb, neg_emb, *, tb_max=512):
    B, d = u_emb.shape
    if B <= tb_max:
        tb, Bp = B, B
    else:
        tb = tb_max
        Bp = _ceil_to(B, tb)
    valid = (jnp.arange(Bp) < B).astype(jnp.float32)[:, None]
    per_row = pl.pallas_call(
        _bpr_kernel,
        out_shape=jax.ShapeDtypeStruct((Bp, 1), jnp.float32),
        grid=(Bp // tb,),
        in_specs=[
            pl.BlockSpec((tb, d), lambda i: (i, 0)),
            pl.BlockSpec((tb, d), lambda i: (i, 0)),
            pl.BlockSpec((tb, d), lambda i: (i, 0)),
            pl.BlockSpec((tb, 1), lambda i: (i, 0)),
        ],
        out_specs=pl.BlockSpec((tb, 1), lambda i: (i, 0)),
        compiler_params=pltpu.CompilerParams(
            dimension_semantics=("parallel",)),
    )(_pad2d(u_emb, Bp, d), _pad2d(pos_emb, Bp, d), _pad2d(neg_emb, Bp, d), valid)
    return jnp.sum(per_row)


# --------------------------------------------------------------------------
# LightGCL forward (training branch, test=False)
# --------------------------------------------------------------------------
def lightgcl_forward(params, adj_norm, u_mul_s, v_mul_s, ut, vt,
                     uids, iids, pos, neg, u_masks, i_masks,
                     *, temp, lambda_1, batch_user, l,
                     tm_max=1024, tk_max=2048, tb_max=512):
    hi = jax.lax.Precision.HIGHEST
    # single bf16 copy of the adjacency; the transposed spmm reads the SAME
    # copy with an in-kernel transposed contraction (no adj.T materialised).
    adj_bf = adj_norm.astype(jnp.bfloat16)

    mm = functools.partial(pallas_matmul, tm_max=tm_max, tk_max=tk_max)

    E_u_list = [params["E_u_0"]]
    E_i_list = [params["E_i_0"]]

    # only the gathered batch rows of G ever feed the loss -> gather the SVD
    # factors once and compute G at B rows instead of n rows.
    u_mul_s_sel = u_mul_s[uids]
    v_mul_s_sel = v_mul_s[iids]

    z_u_sel_list, z_i_sel_list = [], []
    g_u_sel_list, g_i_sel_list = [], []

    for layer in range(1, l + 1):
        E_u_prev = E_u_list[layer - 1]
        E_i_prev = E_i_list[layer - 1]

        # GNN branch: E_new = leaky(adj @ E_prev) + E_prev, single fused output.
        E_u_new = mm(adj_bf, E_i_prev, leaky=True, residual=E_u_prev,
                     low_precision=True)
        E_i_new = mm(adj_bf, E_u_prev, leaky=True, residual=E_i_prev,
                     low_precision=True, trans_a=True)

        # SVD (hyper) branch — tiny (k_svd, d) intermediate, gathered G rows only.
        vt_ei = mm(vt, E_i_prev)
        ut_eu = mm(ut, E_u_prev)
        g_u_sel = mm(u_mul_s_sel, vt_ei, leaky=True)
        g_i_sel = mm(v_mul_s_sel, ut_eu, leaky=True)

        # Z only needed at the batch rows: recover from the fused residual output.
        z_u_sel_list.append(E_u_new[uids] - E_u_prev[uids])
        z_i_sel_list.append(E_i_new[iids] - E_i_prev[iids])
        g_u_sel_list.append(g_u_sel)
        g_i_sel_list.append(g_i_sel)
        E_u_list.append(E_u_new)
        E_i_list.append(E_i_new)

    E_u = sum(E_u_list)
    E_i = sum(E_i_list)

    # Contrastive loss: user/item batches of each layer share W -> one fused
    # call per layer; a group id keeps negatives restricted to the same side.
    # Key-side l2norm + W projection are hoisted out of the O(nb^2) grid.
    Bu = uids.shape[0]
    Bi = iids.shape[0]
    group = jnp.concatenate([jnp.full((Bu, 1), 1.0, jnp.float32),
                             jnp.full((Bi, 1), 2.0, jnp.float32)], axis=0)
    loss_s = jnp.float32(0.0)
    for layer in range(1, l + 1):
        W = params["Ws"][layer - 1]
        z_sel = jnp.concatenate([z_u_sel_list[layer - 1],
                                 z_i_sel_list[layer - 1]], 0)
        g_sel = jnp.concatenate([g_u_sel_list[layer - 1],
                                 g_i_sel_list[layer - 1]], 0)
        m_sel = jnp.concatenate([u_masks[layer - 1], i_masks[layer - 1]], 0)
        gnn = _l2norm(z_sel)                                  # (2B, d), tiny
        hyp = jnp.dot(_l2norm(g_sel), W, precision=hi)        # (2B, d), tiny
        loss_s = loss_s + contrastive_loss(gnn, hyp, m_sel, group, temp,
                                           tb_max=tb_max)

    # BPR loss (batched equivalent of the per-user python loop).
    loss_r = bpr_loss(E_u[uids], E_i[pos], E_i[neg], tb_max=tb_max) / batch_user

    loss = loss_r + lambda_1 * loss_s
    return loss, loss_r, loss_s


# --------------------------------------------------------------------------
# Pure-JAX reference (same numerics choices: bf16 adjacency, f32 elsewhere)
# --------------------------------------------------------------------------
def reference_forward(params, adj_norm, u_mul_s, v_mul_s, ut, vt,
                      uids, iids, pos, neg, u_masks, i_masks,
                      *, temp, lambda_1, batch_user, l):
    hi = jax.lax.Precision.HIGHEST

    def leaky(x):
        return jnp.where(x >= 0.0, x, NEG_SLOPE * x)

    adj_bf = adj_norm.astype(jnp.bfloat16)
    adj_T_bf = adj_norm.T.astype(jnp.bfloat16)

    E_u_list = [params["E_u_0"]]
    E_i_list = [params["E_i_0"]]
    Z_u_list = [None]; Z_i_list = [None]; G_u_list = [None]; G_i_list = [None]
    for _ in range(l):
        Z_u = leaky(jnp.dot(adj_bf, E_i_list[-1].astype(jnp.bfloat16),
                            preferred_element_type=jnp.float32))
        Z_i = leaky(jnp.dot(adj_T_bf, E_u_list[-1].astype(jnp.bfloat16),
                            preferred_element_type=jnp.float32))
        vt_ei = jnp.dot(vt, E_i_list[-1], precision=hi)
        G_u = leaky(jnp.dot(u_mul_s, vt_ei, precision=hi))
        ut_eu = jnp.dot(ut, E_u_list[-1], precision=hi)
        G_i = leaky(jnp.dot(v_mul_s, ut_eu, precision=hi))
        Z_u_list.append(Z_u); Z_i_list.append(Z_i)
        G_u_list.append(G_u); G_i_list.append(G_i)
        E_u_list.append(Z_u + E_u_list[-1])
        E_i_list.append(Z_i + E_i_list[-1])
    E_u = sum(E_u_list); E_i = sum(E_i_list)

    def info_nce(z, g, W, mask):
        gnn = _l2norm(z)
        hyp = jnp.dot(_l2norm(g), W, precision=hi)
        pos_s = jnp.exp(jnp.sum(gnn * hyp, axis=1) / temp)
        neg_s = jnp.sum(jnp.exp(jnp.dot(gnn, hyp.T, precision=hi) / temp), axis=1)
        return jnp.sum(-jnp.log(pos_s / (neg_s + LOG_EPS) + LOG_EPS) * mask[:, 0])

    loss_s = 0.0
    for layer in range(1, l + 1):
        W = params["Ws"][layer - 1]
        loss_s = loss_s + info_nce(Z_u_list[layer][uids], G_u_list[layer][uids],
                                   W, u_masks[layer - 1])
        loss_s = loss_s + info_nce(Z_i_list[layer][iids], G_i_list[layer][iids],
                                   W, i_masks[layer - 1])

    u_emb = E_u[uids]; p_emb = E_i[pos]; n_emb = E_i[neg]
    pos_sc = jnp.sum(u_emb * p_emb, axis=1)
    neg_sc = jnp.sum(u_emb * n_emb, axis=1)
    loss_r = jnp.sum(jnp.maximum(1.0 - pos_sc + neg_sc, 0.0)) / batch_user
    return loss_r + lambda_1 * loss_s, loss_r, loss_s


# --------------------------------------------------------------------------
if __name__ == "__main__":
    key = jax.random.PRNGKey(0)

    n_u, n_i, d, k_svd, l = 256, 384, 32, 32, 2
    B = 128
    temp, lambda_1, batch_user = 0.2, 0.2, float(B)

    keys = jax.random.split(key, 12)

    def xavier(rk, shape):
        bound = (6.0 / (shape[0] + shape[1])) ** 0.5
        return jax.random.uniform(rk, shape, jnp.float32, -bound, bound)

    params = {
        "E_u_0": xavier(keys[0], (n_u, d)),
        "E_i_0": xavier(keys[1], (n_i, d)),
        "Ws": [xavier(keys[2 + i], (d, d)) for i in range(l)],
    }

    # synthetic normalized bipartite adjacency (dense stand-in for the CSR/COO)
    adj_raw = (jax.random.uniform(keys[4], (n_u, n_i)) < 0.05).astype(jnp.float32)
    deg_u = jnp.maximum(adj_raw.sum(1, keepdims=True), 1.0)
    deg_i = jnp.maximum(adj_raw.sum(0, keepdims=True), 1.0)
    adj_norm = adj_raw / jnp.sqrt(deg_u) / jnp.sqrt(deg_i)

    # synthetic truncated-SVD factors:  ut:(k,n_u)  vt:(k,n_i)
    ut = jax.random.normal(keys[5], (k_svd, n_u), jnp.float32) * 0.1
    vt = jax.random.normal(keys[6], (k_svd, n_i), jnp.float32) * 0.1
    s = jnp.abs(jax.random.normal(keys[7], (k_svd,), jnp.float32)) + 0.5
    u_mul_s = ut.T * s            # (n_u, k)
    v_mul_s = vt.T * s            # (n_i, k)

    uids = jax.random.randint(keys[8], (B,), 0, n_u)
    iids = jax.random.randint(keys[9], (B,), 0, n_i)
    pos = jax.random.randint(keys[10], (B,), 0, n_i)
    neg = jax.random.randint(keys[11], (B,), 0, n_i)

    # deterministic Bernoulli(0.5) masks (stand-in for torch.rand(...) > 0.5)
    mkeys = jax.random.split(jax.random.PRNGKey(1), 2 * l)
    u_masks = [(jax.random.uniform(mkeys[2 * i], (B, 1)) > 0.5).astype(jnp.float32)
               for i in range(l)]
    i_masks = [(jax.random.uniform(mkeys[2 * i + 1], (B, 1)) > 0.5).astype(jnp.float32)
               for i in range(l)]

    ref_loss, ref_r, ref_s = reference_forward(
        params, adj_norm, u_mul_s, v_mul_s, ut, vt,
        uids, iids, pos, neg, u_masks, i_masks,
        temp=temp, lambda_1=lambda_1, batch_user=batch_user, l=l)
    jax.block_until_ready((ref_loss, ref_r, ref_s))

    # Run 1: production defaults (large tiles -> single-block grids at demo scale).
    # Run 2: deliberately tiny tile maxima to exercise the multi-tile grids,
    #        the transposed-adjacency path and the flash-style contrastive tiling.
    for tm_max, tk_max, tb_max in ((1024, 2048, 512), (128, 128, 128)):
        loss, loss_r, loss_s = lightgcl_forward(
            params, adj_norm, u_mul_s, v_mul_s, ut, vt,
            uids, iids, pos, neg, u_masks, i_masks,
            temp=temp, lambda_1=lambda_1, batch_user=batch_user, l=l,
            tm_max=tm_max, tk_max=tk_max, tb_max=tb_max)
        jax.block_until_ready((loss, loss_r, loss_s))

        assert jnp.isfinite(loss) and jnp.isfinite(loss_r) and jnp.isfinite(loss_s)
        assert jnp.allclose(loss_r, ref_r, rtol=2e-2, atol=2e-2), (loss_r, ref_r)
        assert jnp.allclose(loss_s, ref_s, rtol=5e-2, atol=5e-1), (loss_s, ref_s)
        assert jnp.allclose(loss, ref_loss, rtol=5e-2, atol=5e-1), (loss, ref_loss)

    print("KERNEL_OK")
</pallas_src>

<mosaic_0001>
module attributes {stable_mosaic.version = 11 : i64} {
  func.func @_mm_kernel(%arg0: i32, %arg1: i32, %arg2: memref<256x384xbf16, #tpu.memory_space<vmem>>, %arg3: memref<384x32xbf16, #tpu.memory_space<vmem>>, %arg4: memref<256x32xf32, #tpu.memory_space<vmem>>, %arg5: memref<256x32xf32, #tpu.memory_space<vmem>>, %arg6: memref<256x32xf32, #tpu.memory_space<vmem>>) attributes {dimension_semantics = [#tpu.dimension_semantics<parallel>, #tpu.dimension_semantics<arbitrary>], iteration_bounds = array<i64: 1, 1>, scalar_prefetch = 0 : i64, scratch_operands = 1 : i64, tpu.core_type = #tpu.core_type<tc>, window_params = [{transform_indices = @transform_0, window_bounds = array<i64: 256, 384>}, {transform_indices = @transform_1, window_bounds = array<i64: 384, 32>}, {transform_indices = @transform_2, window_bounds = array<i64: 256, 32>}, {transform_indices = @transform_3, window_bounds = array<i64: 256, 32>}]} {
    %c0_i32 = arith.constant 0 : i32
    %0 = arith.cmpi eq, %arg1, %c0_i32 : i32
    %1 = arith.extui %0 : i1 to i32
    %c0_i32_0 = arith.constant 0 : i32
    %2 = arith.cmpi ne, %1, %c0_i32_0 : i32
    scf.if %2 {
      %cst_10 = arith.constant 0.000000e+00 : f32
      %12 = vector.broadcast %cst_10 : f32 to vector<256x32xf32>
      %c0_11 = arith.constant 0 : index
      %c0_12 = arith.constant 0 : index
      %13 = vector.load %arg6[%c0_11, %c0_12] : memref<256x32xf32, #tpu.memory_space<vmem>>, vector<256x32xf32>
      tpu.vector_store %arg6[%c0_11, %c0_12], %12 {strides = array<i32>} : memref<256x32xf32, #tpu.memory_space<vmem>>, vector<256x32xf32>,
    } else {
    }
    %c0 = arith.constant 0 : index
    %c0_1 = arith.constant 0 : index
    %3 = vector.load %arg2[%c0, %c0_1] : memref<256x384xbf16, #tpu.memory_space<vmem>>, vector<256x384xbf16>
    %c0_2 = arith.constant 0 : index
    %c0_3 = arith.constant 0 : index
    %4 = vector.load %arg3[%c0_2, %c0_3] : memref<384x32xbf16, #tpu.memory_space<vmem>>, vector<384x32xbf16>
    %c0_4 = arith.constant 0 : index
    %c0_5 = arith.constant 0 : index
    %5 = vector.load %arg6[%c0_4, %c0_5] : memref<256x32xf32, #tpu.memory_space<vmem>>, vector<256x32xf32>
    %cst = arith.constant dense<0.000000e+00> : vector<256x32xf32>
    %6 = tpu.matmul %3, %4, %cst {dimension_numbers = #tpu.dot_dimension_numbers<[1], [0], [0], [1], [0, 0, 1, 1], [], []>} : vector<256x384xbf16>, vector<384x32xbf16>, vector<256x32xf32> -> vector<256x32xf32>
    %7 = arith.addf %5, %6 : vector<256x32xf32>
    %c0_6 = arith.constant 0 : index
    %c0_7 = arith.constant 0 : index
    %8 = vector.load %arg6[%c0_6, %c0_7] : memref<256x32xf32, #tpu.memory_space<vmem>>, vector<256x32xf32>
    tpu.vector_store %arg6[%c0_6, %c0_7], %7 {strides = array<i32>} : memref<256x32xf32, #tpu.memory_space<vmem>>, vector<256x32xf32>,
    %c0_i32_8 = arith.constant 0 : i32
    %9 = arith.cmpi eq, %arg1, %c0_i32_8 : i32
    %10 = arith.extui %9 : i1 to i32
    %c0_i32_9 = arith.constant 0 : i32
    %11 = arith.cmpi ne, %10, %c0_i32_9 : i32
    scf.if %11 {
      %c0_10 = arith.constant 0 : index
      %c0_11 = arith.constant 0 : index
      %12 = vector.load %arg6[%c0_10, %c0_11] : memref<256x32xf32, #tpu.memory_space<vmem>>, vector<256x32xf32>
      %cst_12 = arith.constant 0.000000e+00 : f32
      %13 = vector.broadcast %cst_12 : f32 to vector<256x32xf32>
      %14 = arith.cmpf oge, %12, %13 : vector<256x32xf32>
      %cst_13 = arith.constant 5.000000e-01 : f32
      %15 = vector.broadcast %cst_13 : f32 to vector<256x32xf32>
      %16 = arith.mulf %15, %12 : vector<256x32xf32>
      %17 = arith.select %14, %12, %16 : vector<256x32xi1>, vector<256x32xf32>
      %c0_14 = arith.constant 0 : index
      %c0_15 = arith.constant 0 : index
      %18 = vector.load %arg4[%c0_14, %c0_15] : memref<256x32xf32, #tpu.memory_space<vmem>>, vector<256x32xf32>
      %19 = arith.addf %17, %18 : vector<256x32xf32>
      %c0_16 = arith.constant 0 : index
      %c0_17 = arith.constant 0 : index
      %20 = vector.load %arg5[%c0_16, %c0_17] : memref<256x32xf32, #tpu.memory_space<vmem>>, vector<256x32xf32>
      tpu.vector_store %arg5[%c0_16, %c0_17], %19 {strides = array<i32>} : memref<256x32xf32, #tpu.memory_space<vmem>>, vector<256x32xf32>,
    } else {
    }
    return
  }
  func.func @transform_0(%arg0: i32, %arg1: i32) -> (i32, i32) {
    %c0_i32 = arith.constant 0 : i32
    return %arg0, %arg1 : i32, i32
  }
  func.func @transform_1(%arg0: i32, %arg1: i32) -> (i32, i32) {
    %c0_i32 = arith.constant 0 : i32
    %c0_i32_0 = arith.constant 0 : i32
    return %arg1, %c0_i32 : i32, i32
  }
  func.func @transform_2(%arg0: i32, %arg1: i32) -> (i32, i32) {
    %c0_i32 = arith.constant 0 : i32
    %c0_i32_0 = arith.constant 0 : i32
    return %arg0, %c0_i32 : i32, i32
  }
  func.func @transform_3(%arg0: i32, %arg1: i32) -> (i32, i32) {
    %c0_i32 = arith.constant 0 : i32
    %c0_i32_0 = arith.constant 0 : i32
    return %arg0, %c0_i32 : i32, i32
  }
}

</mosaic_0001>

<bundles_post_ra>
// kernel: tpu_custom_call.1
= control target key start
LH: loop header
LB: loop body
LE: loop exit
PB: predicated region body
PF: predicated region fallthrough
CT: control target
= control target key end

     0   :  { %vm19_vm0 = vcmask 261120   ;;  %s2160_s1 = inlined_call_operand.vmem [shape: bf16[384,32], index: 1, kind: input, shape index: {}]   ;;  %s2161_s0 = inlined_call_operand.vmem [shape: bf16[256,384], index: 0, kind: input, shape index: {}]   ;;  %s2162_s2 = inlined_call_operand.vmem [shape: f32[256,32], index: 2, kind: input, shape index: {}]   ;;  %s2163_s3 = inlined_call_operand.vmem [shape: f32[256,32], index: 3, kind: output, shape index: {}]  }
   0x1   :  { %v1487_v0 = vld [vmem:[%s2160_s1 + $0x78] sm:$0xff]   ;;  %v1489_v2 = vld [vmem:[%s2160_s1 + $0x70] sm:$0xff]   ;;  %v1491_v4 = vld [vmem:[%s2160_s1 + $0x68] sm:$0xff]  }
   0x2   :  { %v1488_v1 = vld [vmem:[%s2160_s1 + $0x38] sm:$0xff]   ;;  %1286 = vmatprep.subr.bf16.mxu0 %v1487_v0  ;;  %1470 = vmatprep.subr.bf16.mxu1 %v1487_v0  ;;  %v1490_v3 = vld [vmem:[%s2160_s1 + $0x30] sm:$0xff]   ;;  %v1492_v5 = vld [vmem:[%s2160_s1 + $0x28] sm:$0xff]  }
   0x3   :  { %1287 = vmatpush3.bf16.msra.mxu0 %v1488_v1  ;;  %1478 = vmatpush3.bf16.msra.mxu1 %v1488_v1  ;;  %v1493_v6 = vld [vmem:[%s2160_s1 + $0x60] sm:$0xff]   ;;  %v1495_v8 = vld [vmem:[%s2160_s1 + $0x58] sm:$0xff]   ;;  %v1497_v10 = vld [vmem:[%s2160_s1 + $0x50] sm:$0xff]  }
   0x4   :  { %1288 = vmatprep.subr.bf16.mxu0 %v1489_v2  ;;  %1471 = vmatprep.subr.bf16.mxu1 %v1489_v2  ;;  %v1494_v7 = vld [vmem:[%s2160_s1 + $0x20] sm:$0xff]   ;;  %v1496_v9 = vld [vmem:[%s2160_s1 + $0x18] sm:$0xff]   ;;  %v1498_v13 = vld [vmem:[%s2160_s1 + $0x10] sm:$0xff]  }
   0x5   :  { %v1505_v11 = vld [vmem:[%s2161_s0 + $0x4] ss:$12 sps:$4 sm:$0xff]   ;;  %v1499_v14 = vld [vmem:[%s2160_s1 + $0x48] sm:$0xff]   ;;  %v1509_v18 = vld [vmem:[%s2160_s1 + $0xb8] sm:$0xff]  }
   0x6   :  { %v1508_v12 = vld [vmem:[%s2161_s0 + $0x124] ss:$12 sps:$4 sm:$0xff]   ;;  %628 = vmatprep.mubr.bf16.mxu0 %v1505_v11  ;;  %v1500_v15 = vld [vmem:[%s2160_s1 + $0x8] sm:$0xff]   ;;  %v1519_v28 = vld [vmem:[%s2161_s0 + $0x34] ss:$12 sps:$4 sm:$0xff]  }
   0x7   :  { %1289 = vmatpush3.bf16.msra.mxu0 %v1490_v3  ;;  %1479 = vmatpush3.bf16.msra.mxu1 %v1490_v3  ;;  %v1501_v16 = vld [vmem:[%s2160_s1 + $0x40] sm:$0xff]   ;;  %v1511_v21 = vld [vmem:[%s2161_s0 + $0x1c] ss:$12 sps:$4 sm:$0xff]   ;;  %v1510_v22 = vld [vmem:[%s2160_s1 + $0xb0] sm:$0xff]  }
   0x8   :  { %1290 = vmatprep.subr.bf16.mxu0 %v1491_v4  ;;  %1472 = vmatprep.subr.bf16.mxu1 %v1491_v4  ;;  %v1502_v17 = vld [vmem:[%s2160_s1] sm:$0xff]   ;;  %v1513_v23 = vld [vmem:[%s2161_s0 + $0x13c] ss:$12 sps:$4 sm:$0xff]   ;;  %v1526_v33 = vld [vmem:[%s2160_s1 + $0x90] sm:$0xff]  }
   0x9   :  { %724 = vmatprep.mubr.bf16.mxu1 %v1508_v12  ;;  %v1503_v19 = vld [vmem:[%s2161_s0] ss:$12 sps:$4 sm:$0xff]   ;;  %v1515_v24 = vld [vmem:[%s2161_s0 + $0x18] ss:$12 sps:$4 sm:$0xff]   ;;  %v1523_v31 = vld [vmem:[%s2161_s0 + $0x30] ss:$12 sps:$4 sm:$0xff]  }
   0xa   :  { %v1506_v20 = vld [vmem:[%s2161_s0 + $0x120] ss:$12 sps:$4 sm:$0xff]   ;;  %v1516_v26 = vld [vmem:[%s2161_s0 + $0x138] ss:$12 sps:$4 sm:$0xff]   ;;  %v1524_v32 = vld [vmem:[%s2161_s0 + $0x150] ss:$12 sps:$4 sm:$0xff]  }
   0xb   :  { %1291 = vmatpush3.bf16.msra.mxu0 %v1492_v5  ;;  %1480 = vmatpush3.bf16.msra.mxu1 %v1492_v5  ;;  %v1517_v25 = vld [vmem:[%s2160_s1 + $0xa8] sm:$0xff]   ;;  %v1518_v27 = vld [vmem:[%s2160_s1 + $0xa0] sm:$0xff]   ;;  %v1525_v30 = vld [vmem:[%s2160_s1 + $0x98] sm:$0xff]  }
   0xc   :  { %1292 = vmatprep.subr.bf16.mxu0 %v1493_v6  ;;  %1473 = vmatprep.subr.bf16.mxu1 %v1493_v6  ;;  %v1521_v29 = vld [vmem:[%s2161_s0 + $0x154] ss:$12 sps:$4 sm:$0xff]   ;;  %v1527_v34 = vld [vmem:[%s2161_s0 + $0x4c] ss:$12 sps:$4 sm:$0xff]   ;;  %v1535_v39 = vld [vmem:[%s2161_s0 + $0x64] ss:$12 sps:$4 sm:$0xff]  }
   0xd   :  { %v1529_v35 = vld [vmem:[%s2161_s0 + $0x16c] ss:$12 sps:$4 sm:$0xff]   ;;  %v1531_v37 = vld [vmem:[%s2161_s0 + $0x48] ss:$12 sps:$4 sm:$0xff]   ;;  %v1534_v40 = vld [vmem:[%s2160_s1 + $0x80] sm:$0xff]  }
   0xe   :  { %v1533_v36 = vld [vmem:[%s2160_s1 + $0x88] sm:$0xff]   ;;  %v1542_v45 = vld [vmem:[%s2161_s0 + $0x38] ss:$12 sps:$4 sm:$0xff]   ;;  %v1544_v47 = vld [vmem:[%s2161_s0 + $0x50] ss:$12 sps:$4 sm:$0xff]  }
   0xf   :  { %1293 = vmatpush3.bf16.msra.mxu0 %v1494_v7  ;;  %1481 = vmatpush3.bf16.msra.mxu1 %v1494_v7  ;;  %v1532_v38 = vld [vmem:[%s2161_s0 + $0x168] ss:$12 sps:$4 sm:$0xff]   ;;  %v1538_v42 = vld [vmem:[%s2161_s0 + $0x60] ss:$12 sps:$4 sm:$0xff]   ;;  %v1543_v46 = vld [vmem:[%s2161_s0 + $0x78] ss:$12 sps:$4 sm:$0xff]  }
  0x10   :  { %1294 = vmatprep.subr.bf16.mxu0 %v1495_v8  ;;  %1474 = vmatprep.subr.bf16.mxu1 %v1495_v8  ;;  %v1537_v41 = vld [vmem:[%s2161_s0 + $0x8] ss:$12 sps:$4 sm:$0xff]   ;;  %v1539_v43 = vld [vmem:[%s2161_s0 + $0x20] ss:$12 sps:$4 sm:$0xff]   ;;  %v1548_v50 = vld [vmem:[%s2161_s0 + $0x90] ss:$12 sps:$4 sm:$0xff]  }
  0x11   :  { %v1540_v44 = vld [vmem:[%s2161_s0 + $0x7c] ss:$12 sps:$4 sm:$0xff]   ;;  %v1545_v48 = vld [vmem:[%s2161_s0 + $0x94] ss:$12 sps:$4 sm:$0xff]   ;;  %v1550_v52 = vld [vmem:[%s2161_s0 + $0xac] ss:$12 sps:$4 sm:$0xff]  }
  0x12   :  { %v1547_v49 = vld [vmem:[%s2161_s0 + $0x68] ss:$12 sps:$4 sm:$0xff]   ;;  %v1549_v51 = vld [vmem:[%s2161_s0 + $0x80] ss:$12 sps:$4 sm:$0xff]   ;;  %v1552_v53 = vld [vmem:[%s2161_s0 + $0x98] ss:$12 sps:$4 sm:$0xff]  }
  0x13   :  { %1295 = vmatpush3.bf16.msra.mxu0 %v1496_v9  ;;  %1482 = vmatpush3.bf16.msra.mxu1 %v1496_v9  ;;  %v1553_v54 = vld [vmem:[%s2161_s0 + $0xa8] ss:$12 sps:$4 sm:$0xff]   ;;  %v1554_v55 = vld [vmem:[%s2161_s0 + $0xb0] ss:$12 sps:$4 sm:$0xff]   ;;  %v1558_v58 = vld [vmem:[%s2161_s0 + $0xc0] ss:$12 sps:$4 sm:$0xff]  }
  0x14   :  { %1296 = vmatprep.subr.bf16.mxu0 %v1497_v10  ;;  %1475 = vmatprep.subr.bf16.mxu1 %v1497_v10  ;;  %v1555_v56 = vld [vmem:[%s2161_s0 + $0xc4] ss:$12 sps:$4 sm:$0xff]   ;;  %v1557_v57 = vld [vmem:[%s2161_s0 + $0xc8] ss:$12 sps:$4 sm:$0xff]   ;;  %v1559_v59 = vld [vmem:[%s2161_s0 + $0xe0] ss:$12 sps:$4 sm:$0xff]  }
  0x15   :  { %v1560_v60 = vld [vmem:[%s2161_s0 + $0xdc] ss:$12 sps:$4 sm:$0xff]   ;;  %v1562_v61 = vld [vmem:[%s2161_s0 + $0xf8] ss:$12 sps:$4 sm:$0xff]   ;;  %v1565_v0 = vld [vmem:[%s2161_s0 + $0xf4] ss:$12 sps:$4 sm:$0xff]  }
  0x16   :  { %v1563_v62 = vld [vmem:[%s2161_s0 + $0xd8] ss:$12 sps:$4 sm:$0xff]   ;;  %v1564_v63 = vld [vmem:[%s2161_s0 + $0x110] ss:$12 sps:$4 sm:$0xff]   ;;  %v1567_v1 = vld [vmem:[%s2161_s0 + $0x128] ss:$12 sps:$4 sm:$0xff]  }
  0x17   :  { %1297 = vmatpush3.bf16.msra.mxu0 %v1498_v13  ;;  %1483 = vmatpush3.bf16.msra.mxu1 %v1498_v13  ;;  %v1568_v2 = vld [vmem:[%s2161_s0 + $0xf0] ss:$12 sps:$4 sm:$0xff]   ;;  %v1569_v3 = vld [vmem:[%s2161_s0 + $0x140] ss:$12 sps:$4 sm:$0xff]   ;;  %v1572_v5 = vld [vmem:[%s2161_s0 + $0x158] ss:$12 sps:$4 sm:$0xff]  }
  0x18   :  { %1298 = vmatprep.subr.bf16.mxu0 %v1499_v14  ;;  %1476 = vmatprep.subr.bf16.mxu1 %v1499_v14  ;;  %v1570_v4 = vld [vmem:[%s2161_s0 + $0x10c] ss:$12 sps:$4 sm:$0xff]   ;;  %v1573_v6 = vld [vmem:[%s2161_s0 + $0x108] ss:$12 sps:$4 sm:$0xff]   ;;  %v1574_v7 = vld [vmem:[%s2161_s0 + $0x170] ss:$12 sps:$4 sm:$0xff]  }
  0x19   :  { %v1575_v8 = vmov 0.0  }
  0x1a   :  { %22 = vst.msk [vmem:[#allocation2 + $0x10] sm:$0xff] %vm19_vm0, %v1575_v8  ;;  %20 = vst.msk [vmem:[#allocation2] sm:$0xff] %vm19_vm0, %v1575_v8 }
  0x1b   :  { %1299 = vmatpush3.bf16.msra.mxu0 %v1500_v15  ;;  %1484 = vmatpush3.bf16.msra.mxu1 %v1500_v15  ;;  %21 = vst.msk [vmem:[#allocation2 + $0x8] sm:$0xff] %vm19_vm0, %v1575_v8  ;;  %23 = vst.msk [vmem:[#allocation2 + $0x18] sm:$0xff] %vm19_vm0, %v1575_v8 }
  0x1c   :  { %1300 = vmatprep.subr.bf16.mxu0 %v1501_v16  ;;  %1477 = vmatprep.subr.bf16.mxu1 %v1501_v16  ;;  %24 = vst.msk [vmem:[#allocation2 + $0x20] sm:$0xff] %vm19_vm0, %v1575_v8  ;;  %25 = vst.msk [vmem:[#allocation2 + $0x28] sm:$0xff] %vm19_vm0, %v1575_v8 }
  0x1d   :  { %26 = vst.msk [vmem:[#allocation2 + $0x30] sm:$0xff] %vm19_vm0, %v1575_v8  ;;  %27 = vst.msk [vmem:[#allocation2 + $0x38] sm:$0xff] %vm19_vm0, %v1575_v8 }
  0x1e   :  { %28 = vst.msk [vmem:[#allocation2 + $0x40] sm:$0xff] %vm19_vm0, %v1575_v8  ;;  %29 = vst.msk [vmem:[#allocation2 + $0x48] sm:$0xff] %vm19_vm0, %v1575_v8 }
  0x1f   :  { %1301 = vmatpush3.bf16.msra.mxu0 %v1502_v17  ;;  %1485 = vmatpush3.bf16.msra.mxu1 %v1502_v17  ;;  %30 = vst.msk [vmem:[#allocation2 + $0x50] sm:$0xff] %vm19_vm0, %v1575_v8  ;;  %31 = vst.msk [vmem:[#allocation2 + $0x58] sm:$0xff] %vm19_vm0, %v1575_v8 }
  0x20   :  { %1422 = vmatprep.subr.bf16.mxu1 %v1509_v18  ;;  %32 = vst.msk [vmem:[#allocation2 + $0x60] sm:$0xff] %vm19_vm0, %v1575_v8  ;;  %33 = vst.msk [vmem:[#allocation2 + $0x68] sm:$0xff] %vm19_vm0, %v1575_v8 }
  0x21   :  { %34 = vst.msk [vmem:[#allocation2 + $0x70] sm:$0xff] %vm19_vm0, %v1575_v8  ;;  %35 = vst.msk [vmem:[#allocation2 + $0x78] sm:$0xff] %vm19_vm0, %v1575_v8 }
  0x22   :  { %629 = vmatmul.mubr.bf16.vlgmr.msra.gmra.mxu0 %v1503_v19  ;;  %725 = vmatmul.mubr.bf16.vlgmr.msra.gmra.mxu1 %v1506_v20  ;;  %36 = vst.msk [vmem:[#allocation2 + $0x80] sm:$0xff] %vm19_vm0, %v1575_v8  ;;  %37 = vst.msk [vmem:[#allocation2 + $0x88] sm:$0xff] %vm19_vm0, %v1575_v8 }
  0x23   :  { %1423 = vmatpush3.bf16.msra.mxu1 %v1509_v18  ;;  %636 = vmatprep.mubr.bf16.mxu0 %v1511_v21  ;;  %38 = vst.msk [vmem:[#allocation2 + $0x90] sm:$0xff] %vm19_vm0, %v1575_v8  ;;  %39 = vst.msk [vmem:[#allocation2 + $0x98] sm:$0xff] %vm19_vm0, %v1575_v8 }
  0x24   :  { %1424 = vmatprep.subr.bf16.mxu1 %v1510_v22  ;;  %732 = vmatprep.mubr.bf16.mxu1 %v1513_v23  ;;  %40 = vst.msk [vmem:[#allocation2 + $0xa0] sm:$0xff] %vm19_vm0, %v1575_v8  ;;  %41 = vst.msk [vmem:[#allocation2 + $0xa8] sm:$0xff] %vm19_vm0, %v1575_v8 }
  0x25   :  { %42 = vst.msk [vmem:[#allocation2 + $0xb0] sm:$0xff] %vm19_vm0, %v1575_v8  ;;  %43 = vst.msk [vmem:[#allocation2 + $0xb8] sm:$0xff] %vm19_vm0, %v1575_v8 }
  0x26   :  { %44 = vst.msk [vmem:[#allocation2 + $0xc0] sm:$0xff] %vm19_vm0, %v1575_v8  ;;  %45 = vst.msk [vmem:[#allocation2 + $0xc8] sm:$0xff] %vm19_vm0, %v1575_v8 }
  0x27   :  { %1425 = vmatpush3.bf16.msra.mxu1 %v1510_v22  ;;  %46 = vst.msk [vmem:[#allocation2 + $0xd0] sm:$0xff] %vm19_vm0, %v1575_v8  ;;  %47 = vst.msk [vmem:[#allocation2 + $0xd8] sm:$0xff] %vm19_vm0, %v1575_v8 }
  0x28   :  { %1426 = vmatprep.subr.bf16.mxu1 %v1517_v25  ;;  %48 = vst.msk [vmem:[#allocation2 + $0xe0] sm:$0xff] %vm19_vm0, %v1575_v8  ;;  %49 = vst.msk [vmem:[#allocation2 + $0xe8] sm:$0xff] %vm19_vm0, %v1575_v8 }
  0x29   :  { %50 = vst.msk [vmem:[#allocation2 + $0xf0] sm:$0xff] %vm19_vm0, %v1575_v8  ;;  %51 = vst.msk [vmem:[#allocation2 + $0xf8] sm:$0xff] %vm19_vm0, %v1575_v8  ;;  %v170_v8 = vld [vmem:[#allocation2 + $0x30] sm:$0xff] }
  0x2a   :  { %637 = vmatmul.mubr.bf16.gmra.mxu0 %v1515_v24  ;;  %733 = vmatmul.mubr.bf16.gmra.mxu1 %v1516_v26 }
  0x2b   :  { %1427 = vmatpush3.bf16.msra.mxu1 %v1517_v25  ;;  %644 = vmatprep.mubr.bf16.mxu0 %v1519_v28 }
  0x2c   :  { %1428 = vmatprep.subr.bf16.mxu1 %v1518_v27  ;;  %740 = vmatprep.mubr.bf16.mxu1 %v1521_v29 }
  0x2f   :  { %1429 = vmatpush3.bf16.msra.mxu1 %v1518_v27 }
  0x30   :  { %1430 = vmatprep.subr.bf16.mxu1 %v1525_v30 }
  0x32   :  { %645 = vmatmul.mubr.bf16.gmra.mxu0 %v1523_v31  ;;  %741 = vmatmul.mubr.bf16.gmra.mxu1 %v1524_v32 }
  0x33   :  { %1431 = vmatpush3.bf16.msra.mxu1 %v1525_v30  ;;  %652 = vmatprep.mubr.bf16.mxu0 %v1527_v34 }
  0x34   :  { %1432 = vmatprep.subr.bf16.mxu1 %v1526_v33  ;;  %748 = vmatprep.mubr.bf16.mxu1 %v1529_v35 }
  0x37   :  { %1433 = vmatpush3.bf16.msra.mxu1 %v1526_v33 }
  0x38   :  { %1434 = vmatprep.subr.bf16.mxu1 %v1533_v36 }
  0x3a   :  { %653 = vmatmul.mubr.bf16.gmra.mxu0 %v1531_v37  ;;  %749 = vmatmul.mubr.bf16.gmra.mxu1 %v1532_v38 }
  0x3b   :  { %1435 = vmatpush3.bf16.msra.mxu1 %v1533_v36  ;;  %660 = vmatprep.mubr.bf16.mxu0 %v1535_v39 }
  0x3c   :  { %1436 = vmatprep.subr.bf16.mxu1 %v1534_v40  ;;  %1438 = vmatprep.mubr.bf16.mxu1 %v1537_v41 }
  0x3f   :  { %1437 = vmatpush3.bf16.msra.mxu1 %v1534_v40 }
  0x42   :  { %661 = vmatmul.mubr.bf16.gmra.mxu0 %v1538_v42  ;;  %1439 = vmatmul.mubr.bf16.vlgmr.msra.gmra.mxu1 %v1539_v43 }
  0x43   :  { %668 = vmatprep.mubr.bf16.mxu0 %v1540_v44  ;;  %1442 = vmatprep.mubr.bf16.mxu1 %v1542_v45 }
  0x4a   :  { %669 = vmatmul.mubr.bf16.gmra.mxu0 %v1543_v46  ;;  %1443 = vmatmul.mubr.bf16.gmra.mxu1 %v1544_v47 }
  0x4b   :  { %676 = vmatprep.mubr.bf16.mxu0 %v1545_v48  ;;  %1446 = vmatprep.mubr.bf16.mxu1 %v1547_v49  ;;  %v166_v49 = vld [vmem:[#allocation2 + $0x10] sm:$0xff] }
  0x52   :  { %677 = vmatmul.mubr.bf16.gmra.mxu0 %v1548_v50  ;;  %1447 = vmatmul.mubr.bf16.gmra.mxu1 %v1549_v51 }
  0x53   :  { %684 = vmatprep.mubr.bf16.mxu0 %v1550_v52  ;;  %1450 = vmatprep.mubr.bf16.mxu1 %v1552_v53 }
  0x5a   :  { %685 = vmatmul.mubr.bf16.gmra.mxu0 %v1553_v54  ;;  %1451 = vmatmul.mubr.bf16.gmra.mxu1 %v1554_v55  ;;  %v164_v54 = vld [vmem:[#allocation2] sm:$0xff] }
  0x5b   :  { %692 = vmatprep.mubr.bf16.mxu0 %v1555_v56  ;;  %1454 = vmatprep.mubr.bf16.mxu1 %v1557_v57 }
  0x62   :  { %693 = vmatmul.mubr.bf16.gmra.mxu0 %v1558_v58  ;;  %1455 = vmatmul.mubr.bf16.gmra.mxu1 %v1559_v59 }
  0x63   :  { %700 = vmatprep.mubr.bf16.mxu0 %v1560_v60  ;;  %1458 = vmatprep.mubr.bf16.mxu1 %v1562_v61  ;;  %v167_v60 = vld [vmem:[#allocation2 + $0x18] sm:$0xff] }
  0x6a   :  { %701 = vmatmul.mubr.bf16.gmra.mxu0 %v1563_v62  ;;  %1459 = vmatmul.mubr.bf16.gmra.mxu1 %v1564_v63 }
  0x6b   :  { %708 = vmatprep.mubr.bf16.mxu0 %v1565_v0  ;;  %1462 = vmatprep.mubr.bf16.mxu1 %v1567_v1 }
  0x72   :  { %709 = vmatmul.mubr.bf16.gmra.mxu0 %v1568_v2  ;;  %1463 = vmatmul.mubr.bf16.gmra.mxu1 %v1569_v3  ;;  %v165_v2 = vld [vmem:[#allocation2 + $0x8] sm:$0xff] }
  0x73   :  { %716 = vmatprep.mubr.bf16.mxu0 %v1570_v4  ;;  %1466 = vmatprep.mubr.bf16.mxu1 %v1572_v5 }
  0x7a   :  { %717 = vmatmul.mubr.bf16.gmra.mxu0 %v1573_v6  ;;  %1467 = vmatmul.mubr.bf16.gmra.mxu1 %v1574_v7 }
  0xe2   :  { %v1302_v9 = vpop.f32.mrf.mxu0  ;;  %v1374_v10 = vpop.f32.mrf.mxu1 }
  0xe4   :  { %v1303_v11 = vpop.f32.mrf.mxu0  ;;  %v1375_v12 = vpop.f32.mrf.mxu1 }
  0xe5   :  { %v1844_v13 = vadd.f32 %v1375_v12, %v1374_v10  ;;  %v1304_v51 = vadd.f32 %v1303_v11, %v1302_v9 }
  0xe6   :  { %v1305_v14 = vpop.f32.mrf.mxu0  ;;  %v1377_v15 = vpop.f32.mrf.mxu1 }
  0xe8   :  { %v1306_v16 = vpop.f32.mrf.mxu0  ;;  %v1378_v17 = vpop.f32.mrf.mxu1 }
  0xe9   :  { %v1846_v18 = vadd.f32 %v1378_v17, %v1377_v15  ;;  %v1307_v62 = vadd.f32 %v1306_v16, %v1305_v14  ;;  %v168_v15 = vld [vmem:[#allocation2 + $0x20] sm:$0xff] }
  0xea   :  { %v1308_v19 = vpop.f32.mrf.mxu0  ;;  %v1380_v20 = vpop.f32.mrf.mxu1 }
  0xec   :  { %v1309_v21 = vpop.f32.mrf.mxu0  ;;  %v1381_v22 = vpop.f32.mrf.mxu1 }
  0xed   :  { %v1848_v23 = vadd.f32 %v1381_v22, %v1380_v20  ;;  %v1310_v47 = vadd.f32 %v1309_v21, %v1308_v19 }
  0xee   :  { %v1311_v24 = vpop.f32.mrf.mxu0  ;;  %v1383_v25 = vpop.f32.mrf.mxu1 }
  0xf0   :  { %v1312_v26 = vpop.f32.mrf.mxu0  ;;  %v1384_v27 = vpop.f32.mrf.mxu1 }
  0xf1   :  { %v1850_v28 = vadd.f32 %v1384_v27, %v1383_v25  ;;  %v1313_v56 = vadd.f32 %v1312_v26, %v1311_v24  ;;  %v171_v24 = vld [vmem:[#allocation2 + $0x38] sm:$0xff]  ;;  %v1116_v27 = vld [vmem:[%s2162_s2 + $0x10] sm:$0xff] }
  0xf2   :  { %v1314_v29 = vpop.f32.mrf.mxu0  ;;  %v1386_v30 = vpop.f32.mrf.mxu1 }
  0xf4   :  { %v1315_v31 = vpop.f32.mrf.mxu0  ;;  %v1387_v32 = vpop.f32.mrf.mxu1 }
  0xf5   :  { %v1852_v33 = vadd.f32 %v1387_v32, %v1386_v30  ;;  %v1316_v10 = vadd.f32 %v1315_v31, %v1314_v29 }
  0xf6   :  { %v1854_v34 = vpop.f32.mrf.mxu0  ;;  %v1389_v35 = vpop.f32.mrf.mxu1 }
  0xf8   :  { %v1318_v36 = vpop.f32.mrf.mxu0  ;;  %v1390_v37 = vpop.f32.mrf.mxu1 }
  0xf9   :  { %v1856_v38 = vadd.f32 %v1390_v37, %v1389_v35  ;;  %v1319_v31 = vadd.f32 %v1318_v36, %v1854_v34  ;;  %v174_v34 = vld [vmem:[#allocation2 + $0x50] sm:$0xff] }
  0xfa   :  { %v1320_v39 = vpop.f32.mrf.mxu0  ;;  %v1858_v40 = vpop.f32.mrf.mxu1 }
  0xfc   :  { %v1321_v41 = vpop.f32.mrf.mxu0  ;;  %v1860_v42 = vpop.f32.mrf.mxu1 }
  0xfd   :  { %v1322_v4 = vadd.f32 %v1321_v41, %v1320_v39 }
  0xfe   :  { %v1323_v43 = vpop.f32.mrf.mxu0  ;;  %v1862_v44 = vpop.f32.mrf.mxu1 }
 0x100   :  { %v1324_v45 = vpop.f32.mrf.mxu0  ;;  %v1864_v46 = vpop.f32.mrf.mxu1 }
 0x101   :  { %v1325_v17 = vadd.f32 %v1324_v45, %v1323_v43  ;;  %v1114_v45 = vld [vmem:[%s2162_s2] sm:$0xff] }
 0x102   :  { %v1866_v48 = vpop.f32.mrf.mxu0  ;;  %v1440_v50 = vpop.f32.mrf.mxu1 }
 0x103   :  { %v800_v52 = vadd.f32 %v1440_v50, %v1310_v47 }
 0x104   :  { %v1868_v53 = vpop.f32.mrf.mxu0  ;;  %v791_v55 = vpop.f32.mrf.mxu1 }
 0x105   :  { %v920_v57 = vadd.f32 %v800_v52, %v166_v49  ;;  %v792_v58 = vadd.f32 %v1304_v51, %v791_v55  ;;  %v169_v49 = vld [vmem:[#allocation2 + $0x28] sm:$0xff] }
 0x106   :  { %v1870_v59 = vpop.f32.mrf.mxu0  ;;  %v1441_v61 = vpop.f32.mrf.mxu1 }
 0x107   :  { %953 = vst.msk [vmem:[#allocation2 + $0x10] sm:$0xff] %vm19_vm0, %v920_v57  ;;  %v918_v63 = vadd.f32 %v792_v58, %v164_v54  ;;  %v803_v0 = vadd.f32 %v1441_v61, %v1313_v56  ;;  %v1117_v57 = vld [vmem:[%s2162_s2 + $0x18] sm:$0xff] }
 0x108   :  { %v1873_v1 = vpop.f32.mrf.mxu0  ;;  %v794_v3 = vpop.f32.mrf.mxu1 }
 0x109   :  { %951 = vst.msk [vmem:[#allocation2] sm:$0xff] %vm19_vm0, %v918_v63  ;;  %v921_v5 = vadd.f32 %v803_v0, %v167_v60  ;;  %v795_v6 = vadd.f32 %v1307_v62, %v794_v3  ;;  %v1328_v60 = vadd.f32 %v1868_v53, %v1866_v48 }
 0x10a   :  { %v1332_v7 = vpop.f32.mrf.mxu0  ;;  %v1444_v9 = vpop.f32.mrf.mxu1 }
 0x10b   :  { %954 = vst.msk [vmem:[#allocation2 + $0x18] sm:$0xff] %vm19_vm0, %v921_v5  ;;  %v919_v11 = vadd.f32 %v795_v6, %v165_v2  ;;  %v816_v12 = vadd.f32 %v1444_v9, %v1322_v4  ;;  %v1115_v6 = vld [vmem:[%s2162_s2 + $0x8] sm:$0xff] }
 0x10c   :  { %v1333_v14 = vpop.f32.mrf.mxu0  ;;  %v807_v16 = vpop.f32.mrf.mxu1 }
 0x10d   :  { %952 = vst.msk [vmem:[#allocation2 + $0x8] sm:$0xff] %vm19_vm0, %v919_v11  ;;  %v924_v19 = vadd.f32 %v816_v12, %v170_v8  ;;  %v808_v20 = vadd.f32 %v1316_v10, %v807_v16  ;;  %v1334_v35 = vadd.f32 %v1333_v14, %v1332_v7  ;;  %v172_v8 = vld [vmem:[#allocation2 + $0x40] sm:$0xff]  ;;  %v175_v11 = vld [vmem:[#allocation2 + $0x58] sm:$0xff]  ;;  %v1120_v16 = vld [vmem:[%s2162_s2 + $0x30] sm:$0xff] }
 0x10e   :  { %v988_v21 = vld [vmem:[#allocation2 + $0x10] sm:$0xff]  ;;  %v1335_v22 = vpop.f32.mrf.mxu0  ;;  %v1445_v25 = vpop.f32.mrf.mxu1 }
 0x10f   :  { %vm1020_vm1 = vcmp.ge.f32.partialorder %v988_v21, 0.0  ;;  %v1052_v26 = vmul.f32 0.5, %v988_v21  ;;  %957 = vst.msk [vmem:[#allocation2 + $0x30] sm:$0xff] %vm19_vm0, %v924_v19  ;;  %v922_v29 = vadd.f32 %v808_v20, %v168_v15  ;;  %v819_v30 = vadd.f32 %v1445_v25, %v1325_v17 }
 0x110   :  { %v986_v32 = vld [vmem:[#allocation2] sm:$0xff]  ;;  %v1336_v37 = vpop.f32.mrf.mxu0  ;;  %v810_v39 = vpop.f32.mrf.mxu1  ;;  %v1331_v19 = vadd.f32 %v1873_v1, %v1870_v59 }
 0x111   :  { %v1084_v41 = vsel %vm1020_vm1, %v988_v21, %v1052_v26  ;;  %vm1018_vm2 = vcmp.ge.f32.partialorder %v986_v32, 0.0  ;;  %v1050_v43 = vmul.f32 0.5, %v986_v32  ;;  %955 = vst.msk [vmem:[#allocation2 + $0x20] sm:$0xff] %vm19_vm0, %v922_v29  ;;  %v925_v47 = vadd.f32 %v819_v30, %v171_v24  ;;  %v1118_v29 = vld [vmem:[%s2162_s2 + $0x20] sm:$0xff] }
 0x112   :  { %v1148_v50 = vadd.f32 %v1116_v27, %v1084_v41  ;;  %v989_v51 = vld [vmem:[#allocation2 + $0x18] sm:$0xff]  ;;  %v811_v52 = vadd.f32 %v1319_v31, %v810_v39  ;;  %v1338_v54 = vpop.f32.mrf.mxu0  ;;  %v1448_v36 = vpop.f32.mrf.mxu1  ;;  %v1337_v63 = vadd.f32 %v1336_v37, %v1335_v22  ;;  %v173_v31 = vld [vmem:[#allocation2 + $0x48] sm:$0xff] }
 0x113   :  { %v1082_v55 = vsel %vm1018_vm2, %v986_v32, %v1050_v43  ;;  %vm1021_vm3 = vcmp.ge.f32.partialorder %v989_v51, 0.0  ;;  %v1053_v56 = vmul.f32 0.5, %v989_v51  ;;  %958 = vst.msk [vmem:[#allocation2 + $0x38] sm:$0xff] %vm19_vm0, %v925_v47  ;;  %v832_v58 = vadd.f32 %v1448_v36, %v1334_v35  ;;  %v1121_v43 = vld [vmem:[%s2162_s2 + $0x38] sm:$0xff] }
 0x114   :  { %1180 = vst.msk [vmem:[%s2163_s3 + $0x10] sm:$0xff] %vm19_vm0, %v1148_v50  ;;  %v1146_v61 = vadd.f32 %v1114_v45, %v1082_v55  ;;  %v987_v62 = vld [vmem:[#allocation2 + $0x8] sm:$0xff]  ;;  %v923_v0 = vadd.f32 %v811_v52, %v169_v49  ;;  %v1339_v2 = vpop.f32.mrf.mxu0  ;;  %v823_v3 = vpop.f32.mrf.mxu1 }
 0x115   :  { %v1085_v4 = vsel %vm1021_vm3, %v989_v51, %v1053_v56  ;;  %vm1019_vm4 = vcmp.ge.f32.partialorder %v987_v62, 0.0  ;;  %v1051_v5 = vmul.f32 0.5, %v987_v62  ;;  %v928_v7 = vadd.f32 %v832_v58, %v174_v34  ;;  %v176_v51 = vld [vmem:[#allocation2 + $0x60] sm:$0xff]  ;;  %v1119_v58 = vld [vmem:[%s2162_s2 + $0x28] sm:$0xff] }
 0x116   :  { %1178 = vst.msk [vmem:[%s2163_s3] sm:$0xff] %vm19_vm0, %v1146_v61  ;;  %v1149_v48 = vadd.f32 %v1117_v57, %v1085_v4  ;;  %v992_v53 = vld [vmem:[#allocation2 + $0x30] sm:$0xff]  ;;  %956 = vst.msk [vmem:[#allocation2 + $0x28] sm:$0xff] %vm19_vm0, %v923_v0  ;;  %v824_v9 = vadd.f32 %v1328_v60, %v823_v3  ;;  %v1905_v10 = vpop.f32.mrf.mxu0  ;;  %v1449_v12 = vpop.f32.mrf.mxu1  ;;  %v1340_v45 = vadd.f32 %v1339_v2, %v1338_v54 }
 0x117   :  { %v1083_v14 = vsel %vm1019_vm4, %v987_v62, %v1051_v5  ;;  %vm1024_vm5 = vcmp.ge.f32.partialorder %v992_v53, 0.0  ;;  %v1056_v15 = vmul.f32 0.5, %v992_v53  ;;  %961 = vst.msk [vmem:[#allocation2 + $0x50] sm:$0xff] %vm19_vm0, %v928_v7  ;;  %v835_v17 = vadd.f32 %v1449_v12, %v1337_v63  ;;  %v178_v61 = vld [vmem:[#allocation2 + $0x70] sm:$0xff] }
 0x118   :  { %1181 = vst.msk [vmem:[%s2163_s3 + $0x18] sm:$0xff] %vm19_vm0, %v1149_v48  ;;  %v1147_v20 = vadd.f32 %v1115_v6, %v1083_v14  ;;  %v990_v21 = vld [vmem:[#allocation2 + $0x20] sm:$0xff]  ;;  %v926_v22 = vadd.f32 %v824_v9, %v172_v8  ;;  %v1342_v24 = vpop.f32.mrf.mxu0  ;;  %v826_v25 = vpop.f32.mrf.mxu1  ;;  %v1124_v2 = vld [vmem:[%s2162_s2 + $0x50] sm:$0xff]  ;;  %v177_v14 = vld [vmem:[#allocation2 + $0x68] sm:$0xff] }
 0x119   :  { %v1088_v26 = vsel %vm1024_vm5, %v992_v53, %v1056_v15  ;;  %vm1022_vm6 = vcmp.ge.f32.partialorder %v990_v21, 0.0  ;;  %v1054_v27 = vmul.f32 0.5, %v990_v21  ;;  %v929_v30 = vadd.f32 %v835_v17, %v175_v11  ;;  %v1122_v17 = vld [vmem:[%s2162_s2 + $0x40] sm:$0xff] }
 0x11a   :  { %1179 = vst.msk [vmem:[%s2163_s3 + $0x8] sm:$0xff] %vm19_vm0, %v1147_v20  ;;  %v1152_v59 = vadd.f32 %v1120_v16, %v1088_v26  ;;  %v993_v1 = vld [vmem:[#allocation2 + $0x38] sm:$0xff]  ;;  %959 = vst.msk [vmem:[#allocation2 + $0x40] sm:$0xff] %vm19_vm0, %v926_v22  ;;  %v827_v32 = vadd.f32 %v1331_v19, %v826_v25  ;;  %v1344_v35 = vpop.f32.mrf.mxu0  ;;  %v1452_v37 = vpop.f32.mrf.mxu1  ;;  %v1343_v6 = vadd.f32 %v1342_v24, %v1905_v10 }
 0x11b   :  { %v1086_v39 = vsel %vm1022_vm6, %v990_v21, %v1054_v27  ;;  %vm1025_vm7 = vcmp.ge.f32.partialorder %v993_v1, 0.0  ;;  %v1057_v41 = vmul.f32 0.5, %v993_v1  ;;  %962 = vst.msk [vmem:[#allocation2 + $0x58] sm:$0xff] %vm19_vm0, %v929_v30  ;;  %v179_v20 = vld [vmem:[#allocation2 + $0x78] sm:$0xff] }
 0x11c   :  { %1184 = vst.msk [vmem:[%s2163_s3 + $0x30] sm:$0xff] %vm19_vm0, %v1152_v59  ;;  %v1150_v47 = vadd.f32 %v1118_v29, %v1086_v39  ;;  %v927_v49 = vadd.f32 %v827_v32, %v173_v31  ;;  %v1345_v50 = vpop.f32.mrf.mxu0  ;;  %v839_v52 = vpop.f32.mrf.mxu1  ;;  %v1125_v25 = vld [vmem:[%s2162_s2 + $0x58] sm:$0xff] }
 0x11d   :  { %v1089_v34 = vsel %vm1025_vm7, %v993_v1, %v1057_v41  ;;  %v991_v36 = vld [vmem:[#allocation2 + $0x28] sm:$0xff]  ;;  %v1346_v55 = vadd.f32 %v1345_v50, %v1344_v35  ;;  %v840_v56 = vadd.f32 %v1340_v45, %v839_v52  ;;  %v180_v45 = vld [vmem:[#allocation2 + $0x80] sm:$0xff] }
 0x11e   :  { %1182 = vst.msk [vmem:[%s2163_s3 + $0x20] sm:$0xff] %vm19_vm0, %v1150_v47  ;;  %v1153_v54 = vadd.f32 %v1121_v43, %v1089_v34  ;;  %vm1023_vm8 = vcmp.ge.f32.partialorder %v991_v36, 0.0  ;;  %v1055_v57 = vmul.f32 0.5, %v991_v36  ;;  %v996_v60 = vld [vmem:[#allocation2 + $0x50] sm:$0xff]  ;;  %960 = vst.msk [vmem:[#allocation2 + $0x48] sm:$0xff] %vm19_vm0, %v927_v49  ;;  %v1347_v62 = vpop.f32.mrf.mxu0  ;;  %v1453_v63 = vpop.f32.mrf.mxu1  ;;  %v1123_v43 = vld [vmem:[%s2162_s2 + $0x48] sm:$0xff] }
 0x11f   :  { %vm1028_vm9 = vcmp.ge.f32.partialorder %v996_v60, 0.0  ;;  %v1060_v0 = vmul.f32 0.5, %v996_v60  ;;  %v848_v3 = vadd.f32 %v1452_v37, %v1346_v55  ;;  %v930_v4 = vadd.f32 %v840_v56, %v176_v51 }
 0x120   :  { %1185 = vst.msk [vmem:[%s2163_s3 + $0x38] sm:$0xff] %vm19_vm0, %v1153_v54  ;;  %v1087_v5 = vsel %vm1023_vm8, %v991_v36, %v1055_v57  ;;  %v1348_v7 = vpop.f32.mrf.mxu0  ;;  %v842_v8 = vpop.f32.mrf.mxu1  ;;  %v1126_v54 = vld [vmem:[%s2162_s2 + $0x60] sm:$0xff] }
 0x121   :  { %v1151_v48 = vadd.f32 %v1119_v58, %v1087_v5  ;;  %v1092_v53 = vsel %vm1028_vm9, %v996_v60, %v1060_v0  ;;  %v994_v9 = vld [vmem:[#allocation2 + $0x40] sm:$0xff]  ;;  %v932_v11 = vadd.f32 %v848_v3, %v178_v61  ;;  %963 = vst.msk [vmem:[#allocation2 + $0x60] sm:$0xff] %vm19_vm0, %v930_v4  ;;  %v1349_v12 = vadd.f32 %v1348_v7, %v1347_v62  ;;  %v1128_v0 = vld [vmem:[%s2162_s2 + $0x70] sm:$0xff]  ;;  %v181_v3 = vld [vmem:[#allocation2 + $0x88] sm:$0xff] }
 0x122   :  { %v1156_v15 = vadd.f32 %v1124_v2, %v1092_v53  ;;  %vm1026_vm10 = vcmp.ge.f32.partialorder %v994_v9, 0.0  ;;  %v1058_v16 = vmul.f32 0.5, %v994_v9  ;;  %v997_v19 = vld [vmem:[#allocation2 + $0x58] sm:$0xff]  ;;  %v843_v10 = vadd.f32 %v1343_v6, %v842_v8  ;;  %v1350_v21 = vpop.f32.mrf.mxu0  ;;  %v1953_v22 = vpop.f32.mrf.mxu1 }
 0x123   :  { %1183 = vst.msk [vmem:[%s2163_s3 + $0x28] sm:$0xff] %vm19_vm0, %v1151_v48  ;;  %vm1029_vm11 = vcmp.ge.f32.partialorder %v997_v19, 0.0  ;;  %v1061_v24 = vmul.f32 0.5, %v997_v19  ;;  %965 = vst.msk [vmem:[#allocation2 + $0x70] sm:$0xff] %vm19_vm0, %v932_v11  ;;  %v851_v26 = vadd.f32 %v1453_v63, %v1349_v12 }
 0x124   :  { %1188 = vst.msk [vmem:[%s2163_s3 + $0x50] sm:$0xff] %vm19_vm0, %v1156_v15  ;;  %v1090_v27 = vsel %vm1026_vm10, %v994_v9, %v1058_v16  ;;  %v931_v29 = vadd.f32 %v843_v10, %v177_v14  ;;  %v1351_v30 = vpop.f32.mrf.mxu0  ;;  %v855_v31 = vpop.f32.mrf.mxu1  ;;  %v1127_v14 = vld [vmem:[%s2162_s2 + $0x68] sm:$0xff]  ;;  %v182_v16 = vld [vmem:[#allocation2 + $0x90] sm:$0xff]  ;;  %v1129_v10 = vld [vmem:[%s2162_s2 + $0x78] sm:$0xff] }
 0x125   :  { %v1154_v59 = vadd.f32 %v1122_v17, %v1090_v27  ;;  %v1093_v1 = vsel %vm1029_vm11, %v997_v19, %v1061_v24  ;;  %v995_v32 = vld [vmem:[#allocation2 + $0x48] sm:$0xff]  ;;  %v933_v35 = vadd.f32 %v851_v26, %v179_v20  ;;  %v1352_v37 = vadd.f32 %v1351_v30, %v1350_v21 }
 0x126   :  { %v1157_v39 = vadd.f32 %v1125_v25, %v1093_v1  ;;  %vm1027_vm12 = vcmp.ge.f32.partialorder %v995_v32, 0.0  ;;  %v1059_v41 = vmul.f32 0.5, %v995_v32  ;;  %964 = vst.msk [vmem:[#allocation2 + $0x68] sm:$0xff] %vm19_vm0, %v931_v29  ;;  %v1353_v47 = vpop.f32.mrf.mxu0  ;;  %v1971_v49 = vpop.f32.mrf.mxu1 }
 0x127   :  { %1186 = vst.msk [vmem:[%s2163_s3 + $0x40] sm:$0xff] %vm19_vm0, %v1154_v59  ;;  %966 = vst.msk [vmem:[#allocation2 + $0x78] sm:$0xff] %vm19_vm0, %v933_v35  ;;  %v856_v50 = vadd.f32 %v1352_v37, %v855_v31  ;;  %v190_v37 = vld [vmem:[#allocation2 + $0xd0] sm:$0xff] }
 0x128   :  { %1189 = vst.msk [vmem:[%s2163_s3 + $0x58] sm:$0xff] %vm19_vm0, %v1157_v39  ;;  %v1091_v51 = vsel %vm1027_vm12, %v995_v32, %v1059_v41  ;;  %v998_v52 = vld [vmem:[#allocation2 + $0x60] sm:$0xff]  ;;  %v1354_v34 = vpop.f32.mrf.mxu0  ;;  %v858_v36 = vpop.f32.mrf.mxu1  ;;  %v183_v32 = vld [vmem:[#allocation2 + $0x98] sm:$0xff] }
 0x129   :  { %v1155_v55 = vadd.f32 %v1123_v43, %v1091_v51  ;;  %vm1030_vm13 = vcmp.ge.f32.partialorder %v998_v52, 0.0  ;;  %v1062_v56 = vmul.f32 0.5, %v998_v52  ;;  %v934_v57 = vadd.f32 %v856_v50, %v180_v45  ;;  %v1130_v41 = vld [vmem:[%s2162_s2 + $0x80] sm:$0xff] }
 0x12a   :  { %v1000_v58 = vld [vmem:[#allocation2 + $0x70] sm:$0xff]  ;;  %v1355_v60 = vadd.f32 %v1354_v34, %v1353_v47  ;;  %v1356_v61 = vpop.f32.mrf.mxu0  ;;  %v1985_v62 = vpop.f32.mrf.mxu1 }
 0x12b   :  { %1187 = vst.msk [vmem:[%s2163_s3 + $0x48] sm:$0xff] %vm19_vm0, %v1155_v55  ;;  %vm1032_vm14 = vcmp.ge.f32.partialorder %v1000_v58, 0.0  ;;  %v1064_v63 = vmul.f32 0.5, %v1000_v58  ;;  %v1094_v2 = vsel %vm1030_vm13, %v998_v52, %v1062_v56  ;;  %967 = vst.msk [vmem:[#allocation2 + $0x80] sm:$0xff] %vm19_vm0, %v934_v57  ;;  %v188_v55 = vld [vmem:[#allocation2 + $0xc0] sm:$0xff] }
 0x12c   :  { %v1158_v4 = vadd.f32 %v1126_v54, %v1094_v2  ;;  %v859_v5 = vadd.f32 %v1355_v60, %v858_v36  ;;  %v1357_v6 = vpop.f32.mrf.mxu0  ;;  %v871_v7 = vpop.f32.mrf.mxu1  ;;  %v184_v54 = vld [vmem:[#allocation2 + $0xa0] sm:$0xff] }
 0x12d   :  { %v1096_v8 = vsel %vm1032_vm14, %v1000_v58, %v1064_v63  ;;  %v999_v48 = vld [vmem:[#allocation2 + $0x68] sm:$0xff]  ;;  %v1358_v53 = vadd.f32 %v1357_v6, %v1356_v61 }
 0x12e   :  { %v1160_v9 = vadd.f32 %v1128_v0, %v1096_v8  ;;  %1190 = vst.msk [vmem:[%s2163_s3 + $0x60] sm:$0xff] %vm19_vm0, %v1158_v4  ;;  %v1001_v11 = vld [vmem:[#allocation2 + $0x78] sm:$0xff]  ;;  %vm1031_vm15 = vcmp.ge.f32.partialorder %v999_v48, 0.0  ;;  %v1063_v12 = vmul.f32 0.5, %v999_v48  ;;  %v935_v15 = vadd.f32 %v859_v5, %v181_v3  ;;  %v1359_v17 = vpop.f32.mrf.mxu0  ;;  %v2002_v19 = vpop.f32.mrf.mxu1 }
 0x12f   :  { %vm1033_vm1 = vcmp.ge.f32.partialorder %v1001_v11, 0.0  ;;  %v1065_v20 = vmul.f32 0.5, %v1001_v11  ;;  %v864_v21 = vadd.f32 %v1953_v22, %v1358_v53 }
 0x130   :  { %1192 = vst.msk [vmem:[%s2163_s3 + $0x70] sm:$0xff] %vm19_vm0, %v1160_v9  ;;  %v1095_v24 = vsel %vm1031_vm15, %v999_v48, %v1063_v12  ;;  %968 = vst.msk [vmem:[#allocation2 + $0x88] sm:$0xff] %vm19_vm0, %v935_v15  ;;  %v1360_v25 = vpop.f32.mrf.mxu0  ;;  %v874_v26 = vpop.f32.mrf.mxu1  ;;  %v1394_v48 = vadd.f32 %v1860_v42, %v1858_v40  ;;  %v194_v40 = vld [vmem:[#allocation2 + $0xf0] sm:$0xff] }
 0x131   :  { %v1097_v27 = vsel %vm1033_vm1, %v1001_v11, %v1065_v20  ;;  %v1159_v29 = vadd.f32 %v1127_v14, %v1095_v24  ;;  %v936_v30 = vadd.f32 %v864_v21, %v182_v16  ;;  %v1361_v31 = vadd.f32 %v1360_v25, %v1359_v17  ;;  %v185_v11 = vld [vmem:[#allocation2 + $0xa8] sm:$0xff]  ;;  %v1132_v17 = vld [vmem:[%s2162_s2 + $0x90] sm:$0xff] }
 0x132   :  { %v1161_v59 = vadd.f32 %v1129_v10, %v1097_v27  ;;  %v1002_v1 = vld [vmem:[#allocation2 + $0x80] sm:$0xff]  ;;  %v1362_v35 = vpop.f32.mrf.mxu0  ;;  %v1464_v22 = vpop.f32.mrf.mxu1 }
 0x133   :  { %1191 = vst.msk [vmem:[%s2163_s3 + $0x68] sm:$0xff] %vm19_vm0, %v1159_v29  ;;  %vm1034_vm2 = vcmp.ge.f32.partialorder %v1002_v1, 0.0  ;;  %v1066_v39 = vmul.f32 0.5, %v1002_v1  ;;  %969 = vst.msk [vmem:[#allocation2 + $0x90] sm:$0xff] %vm19_vm0, %v936_v30  ;;  %v867_v43 = vadd.f32 %v1971_v49, %v1361_v31  ;;  %v896_v45 = vadd.f32 %v1464_v22, %v1848_v23  ;;  %v191_v49 = vld [vmem:[#allocation2 + $0xd8] sm:$0xff]  ;;  %v192_v29 = vld [vmem:[#allocation2 + $0xe0] sm:$0xff] }
 0x134   :  { %1193 = vst.msk [vmem:[%s2163_s3 + $0x78] sm:$0xff] %vm19_vm0, %v1161_v59  ;;  %v1363_v47 = vpop.f32.mrf.mxu0  ;;  %v887_v50 = vpop.f32.mrf.mxu1  ;;  %v1397_v31 = vadd.f32 %v1864_v46, %v1862_v44  ;;  %v186_v44 = vld [vmem:[#allocation2 + $0xb0] sm:$0xff] }
 0x135   :  { %v1098_v51 = vsel %vm1034_vm2, %v1002_v1, %v1066_v39  ;;  %v937_v52 = vadd.f32 %v867_v43, %v183_v32  ;;  %v944_v34 = vadd.f32 %v896_v45, %v190_v37  ;;  %v1364_v36 = vadd.f32 %v1363_v47, %v1362_v35  ;;  %v1133_v39 = vld [vmem:[%s2162_s2 + $0x98] sm:$0xff] }
 0x136   :  { %v1162_v56 = vadd.f32 %v1130_v41, %v1098_v51  ;;  %v888_v57 = vadd.f32 %v1844_v13, %v887_v50  ;;  %v1365_v58 = vpop.f32.mrf.mxu0  ;;  %v1465_v60 = vpop.f32.mrf.mxu1  ;;  %v1131_v13 = vld [vmem:[%s2162_s2 + $0x88] sm:$0xff] }
 0x137   :  { %v1003_v23 = vld [vmem:[#allocation2 + $0x88] sm:$0xff]  ;;  %970 = vst.msk [vmem:[#allocation2 + $0x98] sm:$0xff] %vm19_vm0, %v937_v52  ;;  %977 = vst.msk [vmem:[#allocation2 + $0xd0] sm:$0xff] %vm19_vm0, %v944_v34  ;;  %v872_v61 = vadd.f32 %v1364_v36, %v871_v7  ;;  %v899_v63 = vadd.f32 %v1465_v60, %v1850_v28  ;;  %v1138_v36 = vld [vmem:[%s2162_s2 + $0xc0] sm:$0xff] }
 0x138   :  { %1194 = vst.msk [vmem:[%s2163_s3 + $0x80] sm:$0xff] %vm19_vm0, %v1162_v56  ;;  %vm1035_vm3 = vcmp.ge.f32.partialorder %v1003_v23, 0.0  ;;  %v1067_v0 = vmul.f32 0.5, %v1003_v23  ;;  %v942_v2 = vadd.f32 %v888_v57, %v188_v55  ;;  %v1366_v3 = vpop.f32.mrf.mxu0  ;;  %v890_v4 = vpop.f32.mrf.mxu1  ;;  %v189_v7 = vld [vmem:[#allocation2 + $0xc8] sm:$0xff]  ;;  %v195_v55 = vld [vmem:[#allocation2 + $0xf8] sm:$0xff] }
 0x139   :  { %v938_v5 = vadd.f32 %v872_v61, %v184_v54  ;;  %v945_v6 = vadd.f32 %v899_v63, %v191_v49  ;;  %v1367_v8 = vadd.f32 %v1366_v3, %v1365_v58  ;;  %v891_v28 = vadd.f32 %v1846_v18, %v890_v4  ;;  %v1134_v63 = vld [vmem:[%s2162_s2 + $0xa0] sm:$0xff]  ;;  %v187_v4 = vld [vmem:[#allocation2 + $0xb8] sm:$0xff] }
 0x13a   :  { %v1099_v53 = vsel %vm1035_vm3, %v1003_v23, %v1067_v0  ;;  %v1004_v9 = vld [vmem:[#allocation2 + $0x90] sm:$0xff]  ;;  %975 = vst.msk [vmem:[#allocation2 + $0xc0] sm:$0xff] %vm19_vm0, %v942_v2  ;;  %v1368_v12 = vpop.f32.mrf.mxu0  ;;  %v1468_v14 = vpop.f32.mrf.mxu1  ;;  %v193_v23 = vld [vmem:[#allocation2 + $0xe8] sm:$0xff] }
 0x13b   :  { %v1163_v15 = vadd.f32 %v1131_v13, %v1099_v53  ;;  %vm1036_vm4 = vcmp.ge.f32.partialorder %v1004_v9, 0.0  ;;  %v1068_v16 = vmul.f32 0.5, %v1004_v9  ;;  %971 = vst.msk [vmem:[#allocation2 + $0xa0] sm:$0xff] %vm19_vm0, %v938_v5  ;;  %978 = vst.msk [vmem:[#allocation2 + $0xd8] sm:$0xff] %vm19_vm0, %v945_v6  ;;  %v875_v18 = vadd.f32 %v1367_v8, %v874_v26 }
 0x13c   :  { %v943_v42 = vadd.f32 %v891_v28, %v189_v7  ;;  %v912_v20 = vadd.f32 %v1468_v14, %v1394_v48  ;;  %v1369_v10 = vpop.f32.mrf.mxu0  ;;  %v903_v21 = vpop.f32.mrf.mxu1  ;;  %v1139_v14 = vld [vmem:[%s2162_s2 + $0xc8] sm:$0xff] }
 0x13d   :  { %1195 = vst.msk [vmem:[%s2163_s3 + $0x88] sm:$0xff] %vm19_vm0, %v1163_v15  ;;  %v1100_v24 = vsel %vm1036_vm4, %v1004_v9, %v1068_v16  ;;  %v939_v25 = vadd.f32 %v875_v18, %v185_v11  ;;  %v1370_v27 = vadd.f32 %v1369_v10, %v1368_v12  ;;  %v904_v30 = vadd.f32 %v1852_v33, %v903_v21  ;;  %v1140_v33 = vld [vmem:[%s2162_s2 + $0xd0] sm:$0xff]  ;;  %v1135_v15 = vld [vmem:[%s2162_s2 + $0xa8] sm:$0xff] }
 0x13e   :  { %v1164_v26 = vadd.f32 %v1132_v17, %v1100_v24  ;;  %v1005_v59 = vld [vmem:[#allocation2 + $0x98] sm:$0xff]  ;;  %v1012_v1 = vld [vmem:[#allocation2 + $0xd0] sm:$0xff]  ;;  %976 = vst.msk [vmem:[#allocation2 + $0xc8] sm:$0xff] %vm19_vm0, %v943_v42  ;;  %v948_v32 = vadd.f32 %v912_v20, %v194_v40  ;;  %v1371_v35 = vpop.f32.mrf.mxu0  ;;  %v1469_v37 = vpop.f32.mrf.mxu1 }
 0x13f   :  { %vm1037_vm5 = vcmp.ge.f32.partialorder %v1005_v59, 0.0  ;;  %v1069_v22 = vmul.f32 0.5, %v1005_v59  ;;  %vm1044_vm6 = vcmp.ge.f32.partialorder %v1012_v1, 0.0  ;;  %v1076_v41 = vmul.f32 0.5, %v1012_v1  ;;  %972 = vst.msk [vmem:[#allocation2 + $0xa8] sm:$0xff] %vm19_vm0, %v939_v25  ;;  %v1144_v42 = vld [vmem:[%s2162_s2 + $0xf0] sm:$0xff] }
 0x140   :  { %1196 = vst.msk [vmem:[%s2163_s3 + $0x90] sm:$0xff] %vm19_vm0, %v1164_v26  ;;  %981 = vst.msk [vmem:[#allocation2 + $0xf0] sm:$0xff] %vm19_vm0, %v948_v32  ;;  %v880_v46 = vadd.f32 %v1985_v62, %v1370_v27  ;;  %v946_v43 = vadd.f32 %v904_v30, %v192_v29  ;;  %v915_v45 = vadd.f32 %v1469_v37, %v1397_v31  ;;  %v1372_v47 = vpop.f32.mrf.mxu0  ;;  %v906_v50 = vpop.f32.mrf.mxu1  ;;  %v1142_v29 = vld [vmem:[%s2162_s2 + $0xe0] sm:$0xff] }
 0x141   :  { %v1101_v51 = vsel %vm1037_vm5, %v1005_v59, %v1069_v22  ;;  %v1108_v52 = vsel %vm1044_vm6, %v1012_v1, %v1076_v41  ;;  %v1010_v34 = vld [vmem:[#allocation2 + $0xc0] sm:$0xff]  ;;  %v1373_v56 = vadd.f32 %v1372_v47, %v1371_v35  ;;  %v907_v54 = vadd.f32 %v1856_v38, %v906_v50  ;;  %v1141_v38 = vld [vmem:[%s2162_s2 + $0xd8] sm:$0xff]  ;;  %v1136_v59 = vld [vmem:[%s2162_s2 + $0xb0] sm:$0xff] }
 0x142   :  { %v1165_v57 = vadd.f32 %v1133_v39, %v1101_v51  ;;  %v1172_v58 = vadd.f32 %v1140_v33, %v1108_v52  ;;  %v1006_v49 = vld [vmem:[#allocation2 + $0xa0] sm:$0xff]  ;;  %vm1042_vm7 = vcmp.ge.f32.partialorder %v1010_v34, 0.0  ;;  %v1074_v62 = vmul.f32 0.5, %v1010_v34  ;;  %v1013_v60 = vld [vmem:[#allocation2 + $0xd8] sm:$0xff]  ;;  %979 = vst.msk [vmem:[#allocation2 + $0xe0] sm:$0xff] %vm19_vm0, %v946_v43  ;;  %v1143_v43 = vld [vmem:[%s2162_s2 + $0xe8] sm:$0xff] }
 0x143   :  { %vm1038_vm8 = vcmp.ge.f32.partialorder %v1006_v49, 0.0  ;;  %v1070_v61 = vmul.f32 0.5, %v1006_v49  ;;  %vm1045_vm9 = vcmp.ge.f32.partialorder %v1013_v60, 0.0  ;;  %v1077_v0 = vmul.f32 0.5, %v1013_v60  ;;  %v1145_v22 = vld [vmem:[%s2162_s2 + $0xf8] sm:$0xff] }
 0x144   :  { %1197 = vst.msk [vmem:[%s2163_s3 + $0x98] sm:$0xff] %vm19_vm0, %v1165_v57  ;;  %1204 = vst.msk [vmem:[%s2163_s3 + $0xd0] sm:$0xff] %vm19_vm0, %v1172_v58  ;;  %v1106_v13 = vsel %vm1042_vm7, %v1010_v34, %v1074_v62  ;;  %v940_v2 = vadd.f32 %v880_v46, %v186_v44  ;;  %v949_v3 = vadd.f32 %v915_v45, %v195_v55  ;;  %v1137_v51 = vld [vmem:[%s2162_s2 + $0xb8] sm:$0xff] }
 0x145   :  { %v883_v5 = vadd.f32 %v2002_v19, %v1373_v56  ;;  %v1102_v6 = vsel %vm1038_vm8, %v1006_v49, %v1070_v61  ;;  %v1170_v8 = vadd.f32 %v1138_v36, %v1106_v13  ;;  %v1109_v7 = vsel %vm1045_vm9, %v1013_v60, %v1077_v0  ;;  %v1011_v28 = vld [vmem:[#allocation2 + $0xc8] sm:$0xff] }
 0x146   :  { %v947_v48 = vadd.f32 %v907_v54, %v193_v23  ;;  %v1166_v53 = vadd.f32 %v1134_v63, %v1102_v6  ;;  %v1173_v9 = vadd.f32 %v1141_v38, %v1109_v7  ;;  %v1007_v11 = vld [vmem:[#allocation2 + $0xa8] sm:$0xff]  ;;  %vm1043_vm10 = vcmp.ge.f32.partialorder %v1011_v28, 0.0  ;;  %973 = vst.msk [vmem:[#allocation2 + $0xb0] sm:$0xff] %vm19_vm0, %v940_v2  ;;  %982 = vst.msk [vmem:[#allocation2 + $0xf8] sm:$0xff] %vm19_vm0, %v949_v3 }
 0x147   :  { %v1075_v12 = vmul.f32 0.5, %v1011_v28  ;;  %1202 = vst.msk [vmem:[%s2163_s3 + $0xc0] sm:$0xff] %vm19_vm0, %v1170_v8  ;;  %vm1039_vm11 = vcmp.ge.f32.partialorder %v1007_v11, 0.0  ;;  %v1071_v19 = vmul.f32 0.5, %v1007_v11  ;;  %v1016_v16 = vld [vmem:[#allocation2 + $0xf0] sm:$0xff]  ;;  %v941_v17 = vadd.f32 %v883_v5, %v187_v4 }
 0x148   :  { %980 = vst.msk [vmem:[#allocation2 + $0xe8] sm:$0xff] %vm19_vm0, %v947_v48  ;;  %1198 = vst.msk [vmem:[%s2163_s3 + $0xa0] sm:$0xff] %vm19_vm0, %v1166_v53  ;;  %vm1048_vm12 = vcmp.ge.f32.partialorder %v1016_v16, 0.0  ;;  %v1080_v40 = vmul.f32 0.5, %v1016_v16 }
 0x149   :  { %1205 = vst.msk [vmem:[%s2163_s3 + $0xd8] sm:$0xff] %vm19_vm0, %v1173_v9  ;;  %v1107_v18 = vsel %vm1043_vm10, %v1011_v28, %v1075_v12  ;;  %v1103_v20 = vsel %vm1039_vm11, %v1007_v11, %v1071_v19  ;;  %v1014_v21 = vld [vmem:[#allocation2 + $0xe0] sm:$0xff]  ;;  %974 = vst.msk [vmem:[#allocation2 + $0xb8] sm:$0xff] %vm19_vm0, %v941_v17 }
 0x14a   :  { %v1171_v10 = vadd.f32 %v1139_v14, %v1107_v18  ;;  %v1167_v24 = vadd.f32 %v1135_v15, %v1103_v20  ;;  %v1112_v25 = vsel %vm1048_vm12, %v1016_v16, %v1080_v40  ;;  %vm1046_vm13 = vcmp.ge.f32.partialorder %v1014_v21, 0.0 }
 0x14b   :  { %v1078_v27 = vmul.f32 0.5, %v1014_v21  ;;  %v1176_v30 = vadd.f32 %v1144_v42, %v1112_v25 }
 0x14c   :  { %1203 = vst.msk [vmem:[%s2163_s3 + $0xc8] sm:$0xff] %vm19_vm0, %v1171_v10  ;;  %1199 = vst.msk [vmem:[%s2163_s3 + $0xa8] sm:$0xff] %vm19_vm0, %v1167_v24 }
 0x14d   :  { %v1110_v31 = vsel %vm1046_vm13, %v1014_v21, %v1078_v27  ;;  %1208 = vst.msk [vmem:[%s2163_s3 + $0xf0] sm:$0xff] %vm19_vm0, %v1176_v30  ;;  %v1008_v26 = vld [vmem:[#allocation2 + $0xb0] sm:$0xff]  ;;  %v1017_v32 = vld [vmem:[#allocation2 + $0xf8] sm:$0xff] }
 0x14e   :  { %v1174_v1 = vadd.f32 %v1142_v29, %v1110_v31  ;;  %vm1040_vm14 = vcmp.ge.f32.partialorder %v1008_v26, 0.0  ;;  %v1072_v35 = vmul.f32 0.5, %v1008_v26  ;;  %vm1049_vm15 = vcmp.ge.f32.partialorder %v1017_v32, 0.0 }
 0x14f   :  { %v1081_v37 = vmul.f32 0.5, %v1017_v32  ;;  %v1015_v39 = vld [vmem:[#allocation2 + $0xe8] sm:$0xff] }
 0x150   :  { %1206 = vst.msk [vmem:[%s2163_s3 + $0xe0] sm:$0xff] %vm19_vm0, %v1174_v1  ;;  %vm1047_vm1 = vcmp.ge.f32.partialorder %v1015_v39, 0.0  ;;  %v1079_v41 = vmul.f32 0.5, %v1015_v39  ;;  %v1104_v33 = vsel %vm1040_vm14, %v1008_v26, %v1072_v35  ;;  %v1009_v46 = vld [vmem:[#allocation2 + $0xb8] sm:$0xff] }
 0x151   :  { %v1113_v44 = vsel %vm1049_vm15, %v1017_v32, %v1081_v37  ;;  %v1168_v45 = vadd.f32 %v1136_v59, %v1104_v33  ;;  %vm1041_vm2 = vcmp.ge.f32.partialorder %v1009_v46, 0.0  ;;  %v1073_v50 = vmul.f32 0.5, %v1009_v46 }
 0x152   :  { %v1177_v47 = vadd.f32 %v1145_v22, %v1113_v44  ;;  %v1111_v52 = vsel %vm1047_vm1, %v1015_v39, %v1079_v41 }
 0x153   :  { %1200 = vst.msk [vmem:[%s2163_s3 + $0xb0] sm:$0xff] %vm19_vm0, %v1168_v45  ;;  %v1105_v34 = vsel %vm1041_vm2, %v1009_v46, %v1073_v50  ;;  %v1175_v36 = vadd.f32 %v1143_v43, %v1111_v52 }
 0x154   :  { %1209 = vst.msk [vmem:[%s2163_s3 + $0xf8] sm:$0xff] %vm19_vm0, %v1177_v47  ;;  %v1169_v55 = vadd.f32 %v1137_v51, %v1105_v34 }
 0x155   :  { %1207 = vst.msk [vmem:[%s2163_s3 + $0xe8] sm:$0xff] %vm19_vm0, %v1175_v36 }
 0x156   :  { %1201 = vst.msk [vmem:[%s2163_s3 + $0xb8] sm:$0xff] %vm19_vm0, %v1169_v55 }

</bundles_post_ra>
